<compile_context>
chip_gen: v5e
topology: v5e:2x2
jax: 0.10.0
libtpu: 0.0.40
codegen_flags: <defaults>
</compile_context>

<pallas_src>
import functools

import jax
import jax.numpy as jnp
from jax.experimental import pallas as pl
from jax.experimental.pallas import tpu as pltpu


# ----------------------------------------------------------------------------
# kernel
# ----------------------------------------------------------------------------
def _layer_norm_2d_kernel(x_ref, w_ref, b_ref, o_ref, *, eps, inv_c):
    # x_ref: (1, C, TILE_L)  — one image's channel slab over a lane tile
    # w_ref/b_ref: (1, C, 1) — per-channel affine, broadcast over lanes
    x = x_ref[...].astype(jnp.float32)
    mu = jnp.sum(x, axis=1, keepdims=True) * inv_c            # E[x]    (1,1,T)
    ex2 = jnp.sum(x * x, axis=1, keepdims=True) * inv_c       # E[x^2]  (1,1,T)
    var = jnp.maximum(ex2 - mu * mu, 0.0)                     # biased variance
    inv = jax.lax.rsqrt(var + eps)                            # EUP
    y = (x - mu) * (inv * w_ref[...]) + b_ref[...]            # affine folded in
    o_ref[...] = y.astype(o_ref.dtype)


# ----------------------------------------------------------------------------
# tile sizing
# ----------------------------------------------------------------------------
def _vmem_capacity_bytes():
    """Detected per-core VMEM capacity; conservative v7x fallback (64 MiB)."""
    try:
        info = pltpu.get_tpu_info()
        cap = int(getattr(info, "vmem_capacity_bytes", 0))
        if cap > 0:
            return cap
    except Exception:
        pass
    return 64 << 20


def _pick_lane_tile(hw, c, itemsize, n, budget_bytes):
    """Multiple-of-128 lane tile sized against a dtype-aware VMEM budget.

    Per-lane cost model: double-buffered in + out streams (4 * itemsize bytes)
    plus ~2 f32 working copies of the tile (8 bytes) for the in-kernel f32
    math — conservative enough for v7x's 64 MiB physical VMEM.
    """
    if hw <= 128:
        return hw                                   # full-extent block is legal
    bytes_per_lane = max(c, 1) * (4 * itemsize + 8)
    max_l = max(128, (budget_bytes // bytes_per_lane) // 128 * 128)
    tile = min(max_l, (hw // 128) * 128)
    # Keep >= ~4 total grid blocks so v7x's two TensorCores both get work.
    want_blocks = max(1, -(-4 // max(n, 1)))        # ceil(4 / N)
    if want_blocks > 1:
        cap = -(-hw // want_blocks)                 # ceil(hw / want_blocks)
        cap = max(128, (-(-cap // 128)) * 128)      # round up to 128
        tile = min(tile, cap)
    return max(tile, 128)


# ----------------------------------------------------------------------------
# wrapper
# ----------------------------------------------------------------------------
def layer_norm_2d(x, weight, bias, eps=1e-6):
    """LayerNorm2d.forward: channel-wise layer norm of an NCHW tensor."""
    N, C, H, W = x.shape
    HW = H * W

    x3 = x.reshape(N, C, HW)                        # free reshape, stays NCHW
    w3 = weight.reshape(1, C, 1).astype(jnp.float32)
    b3 = bias.reshape(1, C, 1).astype(jnp.float32)

    vmem_cap = _vmem_capacity_bytes()
    budget = max(8 << 20, vmem_cap // 4)            # 32 MiB on 128 MiB chips, 16 MiB on v7x
    tile_l = _pick_lane_tile(HW, C, jnp.dtype(x.dtype).itemsize, N, budget)
    grid = (N, pl.cdiv(HW, tile_l))                 # padded tail block, no full-HW fallback

    out = pl.pallas_call(
        functools.partial(_layer_norm_2d_kernel, eps=float(eps), inv_c=1.0 / C),
        out_shape=jax.ShapeDtypeStruct((N, C, HW), x.dtype),
        grid=grid,
        in_specs=[
            pl.BlockSpec((1, C, tile_l), lambda n, l: (n, 0, l)),
            pl.BlockSpec((1, C, 1), lambda n, l: (0, 0, 0)),
            pl.BlockSpec((1, C, 1), lambda n, l: (0, 0, 0)),
        ],
        out_specs=pl.BlockSpec((1, C, tile_l), lambda n, l: (n, 0, l)),
        compiler_params=pltpu.CompilerParams(
            dimension_semantics=("parallel", "parallel"),
            vmem_limit_bytes=int(min(vmem_cap // 2, 64 << 20)),
        ),
    )(x3, w3, b3)

    return out.reshape(N, C, H, W)


# ----------------------------------------------------------------------------
# reference (pure JAX) for a sanity check
# ----------------------------------------------------------------------------
def _layer_norm_2d_ref(x, weight, bias, eps=1e-6):
    mu = jnp.mean(x, axis=1, keepdims=True)
    var = jnp.mean((x - mu) ** 2, axis=1, keepdims=True)
    y = (x - mu) / jnp.sqrt(var + eps)
    return weight.reshape(1, -1, 1, 1) * y + bias.reshape(1, -1, 1, 1)


# ----------------------------------------------------------------------------
if __name__ == "__main__":
    key = jax.random.PRNGKey(0)
    kx, kw, kb = jax.random.split(key, 3)

    # small shapes consistent with the module: batch=2, channels=4, spatial 16x16
    x = jax.random.normal(kx, (2, 4, 16, 16), jnp.float32)
    # module init is weight=ones, bias=zeros; perturb so the affine path runs
    weight = 1.0 + 0.1 * jax.random.normal(kw, (4,), jnp.float32)
    bias = 0.1 * jax.random.normal(kb, (4,), jnp.float32)

    fwd = jax.jit(layer_norm_2d)
    out = jax.block_until_ready(fwd(x, weight, bias))

    ref = _layer_norm_2d_ref(x, weight, bias)
    assert out.shape == (2, 4, 16, 16), out.shape
    assert bool(jnp.isfinite(out).all())
    assert jnp.allclose(out, ref, atol=1e-5, rtol=1e-5), float(
        jnp.max(jnp.abs(out - ref)))
    print("KERNEL_OK")
</pallas_src>

<mosaic_0001>
module attributes {stable_mosaic.version = 11 : i64} {
  func.func @_layer_norm_2d_kernel(%arg0: i32, %arg1: i32, %arg2: memref<1x4x128xf32, #tpu.memory_space<vmem>>, %arg3: memref<1x4x1xf32, #tpu.memory_space<vmem>>, %arg4: memref<1x4x1xf32, #tpu.memory_space<vmem>>, %arg5: memref<1x4x128xf32, #tpu.memory_space<vmem>>) attributes {dimension_semantics = [#tpu.dimension_semantics<parallel>, #tpu.dimension_semantics<parallel>], iteration_bounds = array<i64: 2, 2>, scalar_prefetch = 0 : i64, scratch_operands = 0 : i64, tpu.core_type = #tpu.core_type<tc>, window_params = [{transform_indices = @transform_0, window_bounds = array<i64: 1, 4, 128>}, {pipeline_mode = #tpu.pipeline_mode<synchronous>, transform_indices = @transform_1, window_bounds = array<i64: 1, 4, 1>}, {pipeline_mode = #tpu.pipeline_mode<synchronous>, transform_indices = @transform_2, window_bounds = array<i64: 1, 4, 1>}, {transform_indices = @transform_3, window_bounds = array<i64: 1, 4, 128>}]} {
    %c0 = arith.constant 0 : index
    %c0_0 = arith.constant 0 : index
    %c0_1 = arith.constant 0 : index
    %0 = vector.load %arg2[%c0, %c0_0, %c0_1] : memref<1x4x128xf32, #tpu.memory_space<vmem>>, vector<1x4x128xf32>
    %cst = arith.constant dense<0.000000e+00> : vector<1x128xf32>
    %1 = vector.multi_reduction <add>, %0, %cst [1] : vector<1x4x128xf32> to vector<1x128xf32>
    %2 = vector.shape_cast %1 : vector<1x128xf32> to vector<1x1x128xf32>
    %cst_2 = arith.constant 2.500000e-01 : f32
    %3 = vector.broadcast %cst_2 : f32 to vector<1x1x128xf32>
    %4 = arith.mulf %2, %3 : vector<1x1x128xf32>
    %5 = arith.mulf %0, %0 : vector<1x4x128xf32>
    %cst_3 = arith.constant dense<0.000000e+00> : vector<1x128xf32>
    %6 = vector.multi_reduction <add>, %5, %cst_3 [1] : vector<1x4x128xf32> to vector<1x128xf32>
    %7 = vector.shape_cast %6 : vector<1x128xf32> to vector<1x1x128xf32>
    %cst_4 = arith.constant 2.500000e-01 : f32
    %8 = vector.broadcast %cst_4 : f32 to vector<1x1x128xf32>
    %9 = arith.mulf %7, %8 : vector<1x1x128xf32>
    %10 = arith.mulf %4, %4 : vector<1x1x128xf32>
    %11 = arith.subf %9, %10 : vector<1x1x128xf32>
    %cst_5 = arith.constant 0.000000e+00 : f32
    %12 = vector.broadcast %cst_5 : f32 to vector<1x1x128xf32>
    %13 = arith.maximumf %11, %12 : vector<1x1x128xf32>
    %cst_6 = arith.constant 9.99999997E-7 : f32
    %14 = vector.broadcast %cst_6 : f32 to vector<1x1x128xf32>
    %15 = arith.addf %13, %14 : vector<1x1x128xf32>
    %16 = math.rsqrt %15 : vector<1x1x128xf32>
    %17 = vector.broadcast %4 : vector<1x1x128xf32> to vector<1x4x128xf32>
    %18 = arith.subf %0, %17 : vector<1x4x128xf32>
    %c0_7 = arith.constant 0 : index
    %c0_8 = arith.constant 0 : index
    %c0_9 = arith.constant 0 : index
    %19 = vector.load %arg3[%c0_7, %c0_8, %c0_9] : memref<1x4x1xf32, #tpu.memory_space<vmem>>, vector<1x4x1xf32>
    %20 = vector.broadcast %16 : vector<1x1x128xf32> to vector<1x4x128xf32>
    %21 = vector.broadcast %19 : vector<1x4x1xf32> to vector<1x4x128xf32>
    %22 = arith.mulf %20, %21 : vector<1x4x128xf32>
    %23 = arith.mulf %18, %22 : vector<1x4x128xf32>
    %c0_10 = arith.constant 0 : index
    %c0_11 = arith.constant 0 : index
    %c0_12 = arith.constant 0 : index
    %24 = vector.load %arg4[%c0_10, %c0_11, %c0_12] : memref<1x4x1xf32, #tpu.memory_space<vmem>>, vector<1x4x1xf32>
    %25 = vector.broadcast %24 : vector<1x4x1xf32> to vector<1x4x128xf32>
    %26 = arith.addf %23, %25 : vector<1x4x128xf32>
    %c0_13 = arith.constant 0 : index
    %c0_14 = arith.constant 0 : index
    %c0_15 = arith.constant 0 : index
    %27 = vector.load %arg5[%c0_13, %c0_14, %c0_15] : memref<1x4x128xf32, #tpu.memory_space<vmem>>, vector<1x4x128xf32>
    tpu.vector_store %arg5[%c0_13, %c0_14, %c0_15], %26 {strides = array<i32>} : memref<1x4x128xf32, #tpu.memory_space<vmem>>, vector<1x4x128xf32>,
    return
  }
  func.func @transform_0(%arg0: i32, %arg1: i32) -> (i32, i32, i32) {
    %c0_i32 = arith.constant 0 : i32
    %c0_i32_0 = arith.constant 0 : i32
    return %arg0, %c0_i32, %arg1 : i32, i32, i32
  }
  func.func @transform_1(%arg0: i32, %arg1: i32) -> (i32, i32, i32) {
    %c0_i32 = arith.constant 0 : i32
    %c0_i32_0 = arith.constant 0 : i32
    %c0_i32_1 = arith.constant 0 : i32
    %c0_i32_2 = arith.constant 0 : i32
    return %c0_i32, %c0_i32_0, %c0_i32_1 : i32, i32, i32
  }
  func.func @transform_2(%arg0: i32, %arg1: i32) -> (i32, i32, i32) {
    %c0_i32 = arith.constant 0 : i32
    %c0_i32_0 = arith.constant 0 : i32
    %c0_i32_1 = arith.constant 0 : i32
    %c0_i32_2 = arith.constant 0 : i32
    return %c0_i32, %c0_i32_0, %c0_i32_1 : i32, i32, i32
  }
  func.func @transform_3(%arg0: i32, %arg1: i32) -> (i32, i32, i32) {
    %c0_i32 = arith.constant 0 : i32
    %c0_i32_0 = arith.constant 0 : i32
    return %arg0, %c0_i32, %arg1 : i32, i32, i32
  }
}

</mosaic_0001>

<bundles_post_ra>
// kernel: layer_norm_2d.1
= control target key start
LH: loop header
LB: loop body
LE: loop exit
PB: predicated region body
PF: predicated region fallthrough
CT: control target
= control target key end

     0   :  { %s454_s12 = smov 0   ;;  %s456_s13 = smov 0   ;;  %s518_s0 = inlined_call_operand.vmem [shape: f32[2,4,256], index: 0, kind: input, shape index: {}]   ;;  %s519_s1 = inlined_call_operand.vmem [shape: f32[1,4,1], index: 1, kind: input, shape index: {}]   ;;  %s520_s2 = inlined_call_operand.vmem [shape: f32[1,4,1], index: 2, kind: input, shape index: {}]   ;;  %s521_s3 = inlined_call_operand.vmem [shape: f32[2,4,256], index: 3, kind: output, shape index: {}]  }
   0x1   :  { %s458_s14 = smov 0   ;;  %s460_s15 = smov 0  }
   0x2   :  { %s462_s16 = smov 0  }
   0x3 LB: > { %s22_s17 = sadd.s32 1, %s423_s14  ;;  %s25_s18 = sadd.s32 1, %s427_s15  ;;  %s431_s16 = sphi %s462_s16, %s13_s16   ;;  %s427_s15 = sphi %s460_s15, %s525_s15   ;;  %s423_s14 = sphi %s458_s14, %s524_s14   ;;  %s419_s13 = sphi %s456_s13, %s523_s13   ;;  %s415_s12 = sphi %s454_s12, %s522_s12  }
   0x4   : > { %p23_p0 = scmp.ge.s32.totalorder %s22_s17, 2  ;;  %p342_p1 = scmp.ge.s32.totalorder %s431_s16, 1 }
   0x5   : > { %p156_p2 = scmp.lt.s32.totalorder %s431_s16, 5 }
   0x6   : > { %s527_s17 = smov (%p23_p0, %s22_s17), 0  ;;  %s529_s18 = smov (!%p23_p0, %s25_s18), %s427_s15 }
   0x7   : > { %p157_p3 = pnand %p342_p1, %p156_p2  ;;  %p27_p4 = scmp.ge.s32.totalorder %s529_s18, 2 }
   0x8   : > { %p186_p5 = scmp.lt.s32.totalorder (!%p157_p3), %s419_s13, 1  ;;  %p188_p6 = scmp.lt.s32.totalorder (!%p157_p3), %s415_s12, 1 }
   0x9   : > { %s531_s18 = smov (%p27_p4, %s529_s18), 0  ;;  %160 = sbr.rel (%p157_p3) target bundleno = 142 (0x8e), region = 32 }
   0xe   : > { %v236_v0 = vld [vmem:[%s519_s1] sm:$0xf]  ;;  %v433_v1 = vmov 0   ;;  %s533_s13 = smov (!%p186_p5, %s419_s13), 1  ;;  %s535_s12 = smov (!%p188_p6, %s415_s12), 1  ;;  %vm203_vm0 = vcmask 1043456  }
   0xf   : > { %390 = vset.pattern.permute.xlu0 %v433_v1  ;;  %v244_v2 = vld [vmem:[%s520_s2] sm:$0xf]  ;;  %s343_s23 = sshll.u32 %s533_s13, 1 }
  0x10   : > { %239 = vperm.xlu0 %390, %v236_v0   ;;  %s490_s24 = sadd.s32 %s343_s23, %s535_s12 }
  0x11   : > { %s344_s25 = sshll.u32 %s490_s24, 2 }
  0x12   : > { %s193_s28 = scalar_lea.vmem %s518_s0, %s344_s25  ;;  %s201_s4 = scalar_lea.vmem %s521_s3, %s344_s25 }
  0x13   : > { %v202_v3 = vld [vmem:[%s193_s28] sm:$0xf] }
  0x14   : > { %v204_v4 = vsel %vm203_vm0, %v202_v3, 0.0  ;;  %v212_v5 = vmul.f32 %v202_v3, %v202_v3 }
  0x15   : > { %v205_v6 = vrot.slane %v204_v4, 4 }
  0x16   : > { %v213_v7 = vsel %vm203_vm0, %v212_v5, 0.0 }
  0x17   : > { %v206_v8 = vadd.f32 %v205_v6, %v204_v4  ;;  %v214_v9 = vrot.slane %v213_v7, 4 }
  0x18   : > { %247 = vperm.xlu0 %390, %v244_v2  }
  0x19   : > { %v207_v10 = vrot.slane %v206_v8, 2  ;;  %v215_v11 = vadd.f32 %v214_v9, %v213_v7 }
  0x1b   : > { %v208_v12 = vadd.f32 %v207_v10, %v206_v8  ;;  %v216_v13 = vrot.slane %v215_v11, 2 }
  0x1d   : > { %v209_v14 = vrot.slane %v208_v12, 1  ;;  %v217_v15 = vadd.f32 %v216_v13, %v215_v11 }
  0x1f   : > { %v210_v16 = vadd.f32 %v209_v14, %v208_v12  ;;  %v218_v17 = vrot.slane %v217_v15, 1 }
  0x21   : > { %v211_v18 = vmul.f32 0.25, %v210_v16  ;;  %v219_v19 = vadd.f32 %v218_v17, %v217_v15 }
  0x23   : > { %v220_v20 = vmul.f32 0.25, %v219_v19  ;;  %v221_v21 = vmul.f32 %v211_v18, %v211_v18  ;;  %v235_v34 = vsub.f32 %v202_v3, %v211_v18 }
  0x25   : > { %v222_v22 = vsub.f32 %v220_v20, %v221_v21 }
  0x27   : > { %v223_v23 = vmax.f32 %v222_v22, 0.0 }
  0x29   : > { %v224_v24 = vadd.f32 1e-06, %v223_v23 }
  0x2b   : > { %391 = vrsqrt.f32 %v224_v24  ;;  %vm231_vm1 = vweird.f32 %v224_v24 }
  0x31   : > { %v392_v25 = vpop.eup %391 }
  0x32   : > { %v226_v26 = vmul.f32 %v392_v25, %v224_v24  ;;  %vm232_vm2 = vweird.f32 %v392_v25 }
  0x33   : > { %vm233_vm3 = vmor %vm231_vm1, %vm232_vm2 }
  0x34   : > { %v227_v27 = vmul.f32 %v392_v25, %v226_v26 }
  0x36   : > { %v228_v28 = vmul.f32 0.5, %v227_v27 }
  0x38   : > { %v229_v29 = vsub.f32 1.5, %v228_v28 }
  0x3a   : > { %v230_v30 = vmul.f32 %v392_v25, %v229_v29 }
  0x3c   : > { %v234_v32 = vsel %vm233_vm3, %v392_v25, %v230_v30 }
  0x82   : > { %v240_v31 = vpop.permute.xlu0 %239 }
  0x83   : > { %v242_v33 = vmul.f32 %v240_v31, %v234_v32 }
  0x85   : > { %v243_v35 = vmul.f32 %v242_v33, %v235_v34 }
  0x8a   : > { %v248_v36 = vpop.permute.xlu0 %247 }
  0x8b   : > { %v250_v37 = vadd.f32 %v248_v36, %v243_v35 }
  0x8d   : > { %251 = vst [vmem:[%s201_s4] sm:$0xf] %v250_v37 }
  0x8e PF: > { %s13_s16 = sadd.s32 1, %s431_s16   ;;  %s522_s12 = smov %s423_s14 }
  0x8f   : > { %p10_p7 = scmp.ge.s32.totalorder %s13_s16, 6   ;;  %s523_s13 = smov %s427_s15 }
  0x90   : > { %s524_s14 = smov %s527_s17  ;;  %s525_s15 = smov %s531_s18 }
  0x91   :  { %12 = sbr.rel (!%p10_p7) target bundleno = 3 (0x3), region = 62 }

</bundles_post_ra>
